<compile_context>
chip_gen: v7x
topology: tpu7x:2x2x1
jax: 0.10.0
libtpu: 0.0.40
codegen_flags: <defaults>
</compile_context>

<pallas_src>
import functools

import jax
import jax.numpy as jnp
from jax.experimental import pallas as pl
from jax.experimental.pallas import tpu as pltpu


def _contrastive_kernel(o1_ref, o2_ref, lbl_ref, out_ref, *,
                        margin, n_rows, block_rows, tiles_per_core):
    c = pl.program_id(0)          # parallel partial-sum slot (megacore axis)
    t = pl.program_id(1)          # row-tile index within this slot (reduction axis)
    g = c * tiles_per_core + t    # intended global tile index (may run past the end)

    # Init this slot's accumulator (output block is resident across the t axis).
    @pl.when(t == 0)
    def _init():
        out_ref[...] = jnp.zeros_like(out_ref)

    # Load in the input dtype, compute in f32 (keeps v5e happy, bf16 stays
    # narrow over HBM).
    o1 = o1_ref[...].astype(jnp.float32)
    o2 = o2_ref[...].astype(jnp.float32)
    lbl = lbl_ref[...].astype(jnp.float32)

    # torch.nn.functional.pairwise_distance (p=2, eps=1e-6):
    #   d = || x1 - x2 + eps ||_2 along the feature axis.
    diff = o1 - o2 + jnp.float32(1e-6)                        # (TN, D)
    d2 = jnp.sum(diff * diff, axis=-1, keepdims=True)         # (TN, 1)  = d^2
    d = jnp.sqrt(d2)                                          # (TN, 1)
    clamped = jnp.maximum(jnp.float32(margin) - d, 0.0)       # clamp(margin - d, 0)
    per_sample = (1.0 - lbl) * d2 + lbl * clamped * clamped   # (TN, 1)

    # Zero out rows past the true N (ragged last tile / clamped duplicate tile).
    row_ids = g * block_rows + jax.lax.broadcasted_iota(
        jnp.int32, per_sample.shape, 0)
    per_sample = jnp.where(row_ids < n_rows, per_sample, 0.0)

    # Accumulate into the resident (1,1,1) output block (VMEM; written back to
    # HBM only once per slot).
    out_ref[...] += jnp.reshape(jnp.sum(per_sample), (1, 1, 1))

    # Finalize: fold the mean's 1/N into the partial sum on the last tile.
    @pl.when(t == tiles_per_core - 1)
    def _fin():
        out_ref[...] *= jnp.float32(1.0 / n_rows)


def _pick_block_rows(n, d, itemsize):
    """Largest row-tile keeping double-buffered inputs + intermediates <= ~20 MiB."""
    budget = 20 * 1024 * 1024
    per_row = (2 * 2 * d * itemsize   # 2 inputs x 2 pipeline buffers
               + 2 * 128 * 4          # (TN,1) label block lane-pads to 128, x2 buffers
               + 4 * d * 4)           # f32 intermediates (casts, diff, squares)
    tn = budget // per_row
    tn = int(max(8, min(tn, 2048)))
    tn -= tn % 8                      # sublane-aligned block rows
    return n if tn >= n else tn


def contrastive_loss(output1, output2, label, margin=2.0, *,
                     block_rows=None, num_partials=2):
    """output1, output2: (N, D) f32/bf16; label: (N,). Returns scalar f32 loss."""
    n, d = output1.shape
    label2d = label.reshape(n, 1)     # tiny; dtype cast happens inside the kernel

    if block_rows is None:
        block_rows = _pick_block_rows(n, d, output1.dtype.itemsize)
    block_rows = min(int(block_rows), n)
    if block_rows < n:
        block_rows = max(8, block_rows - block_rows % 8)

    num_tiles = pl.cdiv(n, block_rows)
    num_cores = max(1, min(num_partials, num_tiles))   # v7x: 2 TCs; 1 TC elsewhere
    tiles_per_core = pl.cdiv(num_tiles, num_cores)

    def in_map(c, t):
        # Clamp so every DMA'd block index is in range; rows belonging to a
        # clamped (duplicate) or ragged block are masked to zero in the kernel.
        return (jnp.minimum(c * tiles_per_core + t, num_tiles - 1), 0)

    kernel = functools.partial(
        _contrastive_kernel,
        margin=float(margin), n_rows=n, block_rows=block_rows,
        tiles_per_core=tiles_per_core)

    partials = pl.pallas_call(
        kernel,
        out_shape=jax.ShapeDtypeStruct((num_cores, 1, 1), jnp.float32),
        grid=(num_cores, tiles_per_core),
        in_specs=[
            pl.BlockSpec((block_rows, d), in_map),
            pl.BlockSpec((block_rows, d), in_map),
            pl.BlockSpec((block_rows, 1), in_map),
        ],
        out_specs=pl.BlockSpec((1, 1, 1), lambda c, t: (c, 0, 0)),
        compiler_params=pltpu.CompilerParams(
            dimension_semantics=("parallel", "arbitrary"),
            vmem_limit_bytes=40 * 1024 * 1024),
    )(output1, output2, label2d)

    # Sum the (<=2) per-slot partial means.
    return jnp.sum(partials)


def _reference(output1, output2, label, margin=2.0):
    diff = output1 - output2 + 1e-6
    d = jnp.sqrt(jnp.sum(diff * diff, axis=-1))
    return jnp.mean((1.0 - label) * d * d
                    + label * jnp.maximum(margin - d, 0.0) ** 2)


if __name__ == "__main__":
    key = jax.random.PRNGKey(0)
    k1, k2, k3 = jax.random.split(key, 3)

    # Small shapes consistent with the module (N pairs of D-dim embeddings).
    N, D = 8, 32
    output1 = jax.random.normal(k1, (N, D), dtype=jnp.float32)
    output2 = jax.random.normal(k2, (N, D), dtype=jnp.float32)
    label = jax.random.bernoulli(k3, 0.5, (N,)).astype(jnp.float32)

    loss = contrastive_loss(output1, output2, label, margin=2.0)
    jax.block_until_ready(loss)
    ref = _reference(output1, output2, label, margin=2.0)
    assert jnp.allclose(loss, ref, atol=1e-5, rtol=1e-5), (loss, ref)

    # Exercise the tiled/accumulator path: multi-tile grid, ragged last tile,
    # both parallel partial-sum slots, and bf16 inputs cast inside the kernel.
    N2, D2 = 300, 64
    o1b = jax.random.normal(k1, (N2, D2), dtype=jnp.bfloat16)
    o2b = jax.random.normal(k2, (N2, D2), dtype=jnp.bfloat16)
    lblb = jax.random.bernoulli(k3, 0.5, (N2,)).astype(jnp.float32)
    loss_b = contrastive_loss(o1b, o2b, lblb, margin=2.0, block_rows=64)
    jax.block_until_ready(loss_b)
    ref_b = _reference(o1b.astype(jnp.float32), o2b.astype(jnp.float32), lblb, 2.0)
    assert jnp.allclose(loss_b, ref_b, atol=1e-4, rtol=1e-4), (loss_b, ref_b)

    print("KERNEL_OK")
</pallas_src>

<mosaic_0001>
module attributes {stable_mosaic.version = 11 : i64} {
  func.func @_contrastive_kernel(%arg0: i32, %arg1: i32, %arg2: memref<8x32xf32, #tpu.memory_space<vmem>>, %arg3: memref<8x32xf32, #tpu.memory_space<vmem>>, %arg4: memref<8x1xf32, #tpu.memory_space<vmem>>, %arg5: memref<1x1x1xf32, #tpu.memory_space<vmem>>) attributes {dimension_semantics = [#tpu.dimension_semantics<parallel>, #tpu.dimension_semantics<arbitrary>], iteration_bounds = array<i64: 1, 1>, scalar_prefetch = 0 : i64, scratch_operands = 0 : i64, tpu.core_type = #tpu.core_type<tc>, window_params = [{transform_indices = @transform_0, window_bounds = array<i64: 8, 32>}, {transform_indices = @transform_1, window_bounds = array<i64: 8, 32>}, {transform_indices = @transform_2, window_bounds = array<i64: 8, 1>}, {transform_indices = @transform_3, window_bounds = array<i64: 1, 1, 1>}]} {
    %c1_i32 = arith.constant 1 : i32
    %0 = arith.muli %arg0, %c1_i32 : i32
    %1 = arith.addi %0, %arg1 : i32
    %c0_i32 = arith.constant 0 : i32
    %2 = arith.cmpi eq, %arg1, %c0_i32 : i32
    %3 = arith.extui %2 : i1 to i32
    %c0_i32_0 = arith.constant 0 : i32
    %4 = arith.cmpi ne, %3, %c0_i32_0 : i32
    scf.if %4 {
      %cst_21 = arith.constant 0.000000e+00 : f32
      %44 = vector.broadcast %cst_21 : f32 to vector<1x1x1xf32>
      %c0_22 = arith.constant 0 : index
      %c0_23 = arith.constant 0 : index
      %c0_24 = arith.constant 0 : index
      %45 = vector.load %arg5[%c0_22, %c0_23, %c0_24] : memref<1x1x1xf32, #tpu.memory_space<vmem>>, vector<1x1x1xf32>
      tpu.vector_store %arg5[%c0_22, %c0_23, %c0_24], %44 {strides = array<i32>} : memref<1x1x1xf32, #tpu.memory_space<vmem>>, vector<1x1x1xf32>,
    } else {
    }
    %c0 = arith.constant 0 : index
    %c0_1 = arith.constant 0 : index
    %5 = vector.load %arg2[%c0, %c0_1] : memref<8x32xf32, #tpu.memory_space<vmem>>, vector<8x32xf32>
    %c0_2 = arith.constant 0 : index
    %c0_3 = arith.constant 0 : index
    %6 = vector.load %arg3[%c0_2, %c0_3] : memref<8x32xf32, #tpu.memory_space<vmem>>, vector<8x32xf32>
    %c0_4 = arith.constant 0 : index
    %c0_5 = arith.constant 0 : index
    %7 = vector.load %arg4[%c0_4, %c0_5] : memref<8x1xf32, #tpu.memory_space<vmem>>, vector<8x1xf32>
    %8 = arith.subf %5, %6 : vector<8x32xf32>
    %cst = arith.constant 9.99999997E-7 : f32
    %9 = vector.broadcast %cst : f32 to vector<8x32xf32>
    %10 = arith.addf %8, %9 : vector<8x32xf32>
    %11 = arith.mulf %10, %10 : vector<8x32xf32>
    %cst_6 = arith.constant dense<0.000000e+00> : vector<8xf32>
    %12 = vector.multi_reduction <add>, %11, %cst_6 [1] : vector<8x32xf32> to vector<8xf32>
    %13 = vector.shape_cast %12 : vector<8xf32> to vector<8x1xf32>
    %14 = math.sqrt %13 : vector<8x1xf32>
    %cst_7 = arith.constant 2.000000e+00 : f32
    %15 = vector.broadcast %cst_7 : f32 to vector<8x1xf32>
    %16 = arith.subf %15, %14 : vector<8x1xf32>
    %cst_8 = arith.constant 0.000000e+00 : f32
    %17 = vector.broadcast %cst_8 : f32 to vector<8x1xf32>
    %18 = arith.maximumf %16, %17 : vector<8x1xf32>
    %cst_9 = arith.constant 1.000000e+00 : f32
    %19 = vector.broadcast %cst_9 : f32 to vector<8x1xf32>
    %20 = arith.subf %19, %7 : vector<8x1xf32>
    %21 = arith.mulf %20, %13 : vector<8x1xf32>
    %22 = arith.mulf %7, %18 : vector<8x1xf32>
    %23 = arith.mulf %22, %18 : vector<8x1xf32>
    %24 = arith.addf %21, %23 : vector<8x1xf32>
    %c8_i32 = arith.constant 8 : i32
    %25 = arith.muli %1, %c8_i32 : i32
    %26 = tpu.iota {dimensions = array<i32: 0>} : vector<8x1xi32>
    %27 = vector.broadcast %25 : i32 to vector<8x1xi32>
    %28 = arith.addi %27, %26 : vector<8x1xi32>
    %c8_i32_10 = arith.constant 8 : i32
    %29 = vector.broadcast %c8_i32_10 : i32 to vector<8x1xi32>
    %30 = arith.cmpi slt, %28, %29 : vector<8x1xi32>
    %cst_11 = arith.constant 0.000000e+00 : f32
    %31 = vector.broadcast %cst_11 : f32 to vector<8x1xf32>
    %32 = arith.select %30, %24, %31 : vector<8x1xi1>, vector<8x1xf32>
    %c0_12 = arith.constant 0 : index
    %c0_13 = arith.constant 0 : index
    %c0_14 = arith.constant 0 : index
    %33 = vector.load %arg5[%c0_12, %c0_13, %c0_14] : memref<1x1x1xf32, #tpu.memory_space<vmem>>, vector<1x1x1xf32>
    %34 = vector.shape_cast %32 : vector<8x1xf32> to vector<1x8x1xf32>
    %cst_15 = arith.constant dense<0.000000e+00> : vector<1xf32>
    %35 = vector.multi_reduction <add>, %34, %cst_15 [1, 2] : vector<1x8x1xf32> to vector<1xf32>
    %36 = vector.shape_cast %35 : vector<1xf32> to vector<1x1x1xf32>
    %37 = vector.extract %36[0, 0, 0] : f32 from vector<1x1x1xf32>
    %38 = vector.broadcast %37 : f32 to vector<1x1x1xf32>
    %39 = arith.addf %33, %38 : vector<1x1x1xf32>
    %c0_16 = arith.constant 0 : index
    %c0_17 = arith.constant 0 : index
    %c0_18 = arith.constant 0 : index
    %40 = vector.load %arg5[%c0_16, %c0_17, %c0_18] : memref<1x1x1xf32, #tpu.memory_space<vmem>>, vector<1x1x1xf32>
    tpu.vector_store %arg5[%c0_16, %c0_17, %c0_18], %39 {strides = array<i32>} : memref<1x1x1xf32, #tpu.memory_space<vmem>>, vector<1x1x1xf32>,
    %c0_i32_19 = arith.constant 0 : i32
    %41 = arith.cmpi eq, %arg1, %c0_i32_19 : i32
    %42 = arith.extui %41 : i1 to i32
    %c0_i32_20 = arith.constant 0 : i32
    %43 = arith.cmpi ne, %42, %c0_i32_20 : i32
    scf.if %43 {
      %c0_21 = arith.constant 0 : index
      %c0_22 = arith.constant 0 : index
      %c0_23 = arith.constant 0 : index
      %44 = vector.load %arg5[%c0_21, %c0_22, %c0_23] : memref<1x1x1xf32, #tpu.memory_space<vmem>>, vector<1x1x1xf32>
      %cst_24 = arith.constant 1.250000e-01 : f32
      %45 = vector.broadcast %cst_24 : f32 to vector<1x1x1xf32>
      %46 = arith.mulf %44, %45 : vector<1x1x1xf32>
      %c0_25 = arith.constant 0 : index
      %c0_26 = arith.constant 0 : index
      %c0_27 = arith.constant 0 : index
      %47 = vector.load %arg5[%c0_25, %c0_26, %c0_27] : memref<1x1x1xf32, #tpu.memory_space<vmem>>, vector<1x1x1xf32>
      tpu.vector_store %arg5[%c0_25, %c0_26, %c0_27], %46 {strides = array<i32>} : memref<1x1x1xf32, #tpu.memory_space<vmem>>, vector<1x1x1xf32>,
    } else {
    }
    return
  }
  func.func @transform_0(%arg0: i32, %arg1: i32) -> (i32, i32) {
    %c1_i32 = arith.constant 1 : i32
    %0 = arith.muli %arg0, %c1_i32 : i32
    %1 = arith.addi %0, %arg1 : i32
    %c0_i32 = arith.constant 0 : i32
    %2 = arith.minsi %1, %c0_i32 : i32
    %c0_i32_0 = arith.constant 0 : i32
    %c0_i32_1 = arith.constant 0 : i32
    return %2, %c0_i32_0 : i32, i32
  }
  func.func @transform_1(%arg0: i32, %arg1: i32) -> (i32, i32) {
    %c1_i32 = arith.constant 1 : i32
    %0 = arith.muli %arg0, %c1_i32 : i32
    %1 = arith.addi %0, %arg1 : i32
    %c0_i32 = arith.constant 0 : i32
    %2 = arith.minsi %1, %c0_i32 : i32
    %c0_i32_0 = arith.constant 0 : i32
    %c0_i32_1 = arith.constant 0 : i32
    return %2, %c0_i32_0 : i32, i32
  }
  func.func @transform_2(%arg0: i32, %arg1: i32) -> (i32, i32) {
    %c1_i32 = arith.constant 1 : i32
    %0 = arith.muli %arg0, %c1_i32 : i32
    %1 = arith.addi %0, %arg1 : i32
    %c0_i32 = arith.constant 0 : i32
    %2 = arith.minsi %1, %c0_i32 : i32
    %c0_i32_0 = arith.constant 0 : i32
    %c0_i32_1 = arith.constant 0 : i32
    return %2, %c0_i32_0 : i32, i32
  }
  func.func @transform_3(%arg0: i32, %arg1: i32) -> (i32, i32, i32) {
    %c0_i32 = arith.constant 0 : i32
    %c0_i32_0 = arith.constant 0 : i32
    %c0_i32_1 = arith.constant 0 : i32
    return %arg0, %c0_i32, %c0_i32_0 : i32, i32, i32
  }
}

</mosaic_0001>

<bundles_post_ra>
// kernel: tpu_custom_call.1
= control target key start
LH: loop header
LB: loop body
LE: loop exit
PB: predicated region body
PF: predicated region fallthrough
CT: control target
= control target key end

     0   :  { %8 = vsyncpa [#allocation3], 0  ;;  %s289_s0 = inlined_call_operand.vmem [shape: f32[8,32], index: 0, kind: input, shape index: {}]   ;;  %s290_s1 = inlined_call_operand.hbm [shape: f32[8,32], index: 1, kind: input, shape index: {}]   ;;  %s291_s2 = inlined_call_operand.vmem [shape: f32[8,1], index: 2, kind: input, shape index: {}]   ;;  %s292_s3 = inlined_call_operand.hbm [shape: f32[1,1,1], index: 3, kind: output, shape index: {}]  }
   0x1   :  { %9 = vsyncpa [#allocation4], 0  ;;  %s233_s12 = smov [#allocation2]   ;;  %s185_s16 = scalar_lea.hbm %s290_s1, 128 }
   0x2   :  { %s33_s13 = sshll.u32 %s233_s12, 4  ;;  %p186_p0 = scmp.ne.s32.totalorder %s290_s1, %s185_s16  ;;  %s34_s13 = int_to_ptr.vmem [resolvable:$true] %s33_s13 }
   0x3   :  { %p189_p1 = scmp.lt.u32.totalorder %s185_s16, %s290_s1 }
   0x5   :  { %p191_p2 = pnand %p189_p1, %p186_p0 }
   0x7   :  { %194 = shalt.err (!%p191_p2)
}
   0x8   :  { %s195_s21 = scalar_lea.vmem %s34_s13, 128  ;;  %p200_p4 = scmp.lt.s32.totalorder %s34_s13, %s34_s13 }
   0x9   :  { %p196_p3 = scmp.ne.s32.totalorder %s34_s13, %s195_s21  ;;  %p201_p5 = scmp.lt.s32.totalorder %s195_s21, %s195_s21 }
   0xb   :  { %p202_p6 = por %p201_p5, %p200_p4 }
   0xd   :  { %p203_p7 = pnand %p202_p6, %p196_p3 }
   0xf   :  { %206 = shalt.err (!%p203_p7)
}
  0x10   :  { %36 = dma.hbm_to_vmem [thread:$0]  %s290_s1, 128, %s34_s13, [#allocation3]  }
  0x11   :  { %229 = dma.done.wait [#allocation3], 128  }
  0x12   :  { %230 = vsyncadd [#allocation3], 4294967168  ;;  %v96_v0 = vld [vmem:[%s289_s0] sm:$0xff]  ;;  %vm102_vm0 = vcmask 261120   ;;  %vm128_vm3 = vcmask 7168   ;;  %vm94_vm4 = vcmask 0  }
  0x13   :  { %v97_v1 = vld [vmem:[#allocation2] sm:$0xff]  ;;  %v234_v21 = vmov 0.0  }
  0x14   :  { %v99_v2 = vsub.f32 %v96_v0, %v97_v1  ;;  %v98_v11 = vld [vmem:[%s291_s2] sm:$0xff]  ;;  %95 = vst.msk [vmem:[#allocation5] sm:$0x1] %vm94_vm4, %v234_v21  ;;  %s235_s2 = smov [#allocation5]  }
  0x15   :  { %v115_v15 = vsub.f32 1.0, %v98_v11  ;;  %s155_s27 = sshll.u32 %s235_s2, 4  ;;  %s156_s27 = int_to_ptr.vmem [resolvable:$true] %s155_s27 }
  0x16   :  { %v100_v3 = vadd.f32 1e-06, %v99_v2  ;;  %s207_s28 = scalar_lea.vmem %s156_s27, 16  ;;  %s211_s29 = scalar_lea.vmem %s156_s27, 32 }
  0x17   :  { %p208_p8 = scmp.ne.s32.totalorder %s156_s27, %s207_s28  ;;  %p212_p9 = scmp.lt.s32.totalorder %s156_s27, %s156_s27 }
  0x18   :  { %v101_v4 = vmul.f32 %v100_v3, %v100_v3  ;;  %p213_p10 = scmp.lt.s32.totalorder %s211_s29, %s207_s28 }
  0x1a   :  { %v103_v5 = vsel %vm102_vm0, %v101_v4, 0.0  ;;  %p214_p11 = por %p213_p10, %p212_p9 }
  0x1b   :  { %104 = vadd.xlane.f32.xlu0 %v103_v5  ;;  %v127_v29 = vld [vmem:[#allocation5] sm:$0x1] }
  0x1c   :  { %p215_p12 = pnand %p214_p11, %p208_p8 }
  0xa8   :  { %v105_v6 = vpop.xlane.xlu0 %104 }
  0xa9   :  { %183 = vrsqrt.f32 %v105_v6  ;;  %vm108_vm1 = vcmp.eq.f32.partialorder %v105_v6, inf  ;;  %v111_v9 = vand.u32 2147483648, %v105_v6  ;;  %vm110_vm2 = vcmp.eq.f32.partialorder %v105_v6, 0.0 }
  0xaa   :  { %v116_v17 = vmul.f32 %v115_v15, %v105_v6 }
  0xb3   :  { %v184_v7 = vpop.eup %183 }
  0xb4   :  { %v107_v8 = vmul.f32 %v184_v7, %v105_v6 }
  0xb6   :  { %v109_v10 = vsel %vm108_vm1, %v105_v6, %v107_v8 }
  0xb7   :  { %v112_v12 = vsel %vm110_vm2, %v111_v9, %v109_v10 }
  0xb8   :  { %v113_v13 = vsub.f32 2.0, %v112_v12 }
  0xba   :  { %v114_v14 = vmax.f32 %v113_v13, 0.0 }
  0xbc   :  { %v117_v16 = vmul.f32 %v114_v14, %v98_v11 }
  0xbe   :  { %v118_v18 = vmul.f32 %v117_v16, %v114_v14 }
  0xc0   :  { %v119_v19 = vadd.f32 %v118_v18, %v116_v17 }
  0xc2   :  { %v129_v20 = vsel %vm128_vm3, %v119_v19, 0.0 }
  0xc3   :  { %130 = vadd.xlane.f32.xlu0 %v129_v20 }
 0x150   :  { %v131_v22 = vpop.xlane.xlu0 %130 }
 0x151   :  { %v132_v23 = vrot.slane %v131_v22, 4 }
 0x153   :  { %v133_v24 = vadd.f32 %v132_v23, %v131_v22 }
 0x155   :  { %v134_v25 = vrot.slane %v133_v24, 2 }
 0x157   :  { %v135_v26 = vadd.f32 %v134_v25, %v133_v24 }
 0x159   :  { %v136_v27 = vrot.slane %v135_v26, 1 }
 0x15b   :  { %v137_v28 = vadd.f32 %v136_v27, %v135_v26 }
 0x15d   :  { %178 = vpush %v137_v28 }
 0x18e   :  { %s179_s0 = spop %178 }
 0x18f   :  { %v139_v30 = vstv %s179_s0 }
 0x190   :  { %v140_v31 = vadd.f32 %v139_v30, %v127_v29 }
 0x192   :  { %142 = vst.msk [vmem:[#allocation5] sm:$0x1] %vm94_vm4, %v140_v31 }
 0x199   :  { %v146_v32 = vld [vmem:[#allocation5] sm:$0x1] }
 0x19a   :  { %v147_v33 = vmul.f32 0.125, %v146_v32 }
 0x19c   :  { %148 = vst.msk [vmem:[#allocation5] sm:$0x1] %vm94_vm4, %v147_v33 }
 0x19d   :  { %218 = shalt.err (!%p215_p12)
}
 0x19e   :  { %s219_s5 = scalar_lea.hbm %s292_s3, 16 }
 0x19f   :  { %p220_p13 = scmp.ne.s32.totalorder %s292_s3, %s219_s5  ;;  %p223_p0 = scmp.lt.u32.totalorder %s219_s5, %s292_s3 }
 0x1a1   :  { %p225_p1 = pnand %p223_p0, %p220_p13 }
 0x1a3   :  { %228 = shalt.err (!%p225_p1)
}
 0x1a4   :  { %158 = dma.vmem_to_hbm [thread:$0]  %s156_s27, 16, %s292_s3, [#allocation4]  }
 0x1a5   :  { %231 = dma.done.wait [#allocation4], 16  }
 0x1a6   :  { %232 = vsyncadd [#allocation4], 4294967280 }
 0x1a7   :  { %162 = vsyncpa [#allocation3], 1 }
 0x1a8   :  { %163 = vsyncpa [#allocation4], 1 }

</bundles_post_ra>
